<compile_context>
chip_gen: v5e
topology: v5e:2x2
jax: 0.10.0
libtpu: 0.0.40
codegen_flags: <defaults>
</compile_context>

<pallas_src>
import functools

import jax
import jax.numpy as jnp
from jax.experimental import pallas as pl
from jax.experimental.pallas import tpu as pltpu


_VMEM_LIMIT_BYTES = 48 * 1024 * 1024  # > 16/32 MiB defaults, < v7x 64 MiB phys.


# ----------------------------------------------------------------------------
# Kernels
# ----------------------------------------------------------------------------
def _revin_norm_kernel(x_ref, w_ref, bt_ref, y_ref, mean_ref, std_ref, tmp_ref,
                       *, eps, seq_len, k_groups, num_features):
    """x_ref: (bb, T//k, k*C).  w_ref: (1,1,C) f32.  bt_ref: (1,1,k*C) f32.

    tmp_ref is a (bb, 1, k*C) f32 scratch used to (a) hold the per-(group,
    channel) partial sums and (b) hold the lane-tiled per-channel mean /
    scale so the main elementwise work stays lane-dense.
    """
    c = num_features
    k = k_groups
    inv_t = jnp.float32(1.0 / seq_len)

    x = x_ref[...]                                           # (bb, Tk, kC)

    # ---- pass 1: mean ------------------------------------------------------
    # Per-(group, channel) sums accumulated in f32 (lane-dense reduce), then
    # the k lane groups are combined with a tiny unrolled slice/add.
    tmp_ref[...] = jnp.sum(x, axis=1, keepdims=True, dtype=jnp.float32)
    tot = tmp_ref[:, :, 0:c]
    for j in range(1, k):
        tot = tot + tmp_ref[:, :, j * c:(j + 1) * c]
    mean_c = tot * inv_t                                     # (bb, 1, C)
    for j in range(k):                                       # lane-tile mean
        tmp_ref[:, :, j * c:(j + 1) * c] = mean_c

    # Centered values (two-pass variance; x already resident in VMEM so this
    # second pass is HBM-free).  f32 for numerical robustness.
    d = x.astype(jnp.float32) - tmp_ref[...]                 # (bb, Tk, kC)

    # ---- pass 2: variance --------------------------------------------------
    tmp_ref[...] = jnp.sum(d * d, axis=1, keepdims=True)
    tot = tmp_ref[:, :, 0:c]
    for j in range(1, k):
        tot = tot + tmp_ref[:, :, j * c:(j + 1) * c]
    var_c = tot * inv_t                                      # biased var >= 0
    std_c = jnp.sqrt(var_c + eps)                            # (bb, 1, C)
    scale_c = w_ref[...] * jax.lax.rsqrt(var_c + eps)        # (bb, 1, C)
    for j in range(k):                                       # lane-tile scale
        tmp_ref[:, :, j * c:(j + 1) * c] = scale_c

    # ---- normalize: y = (x - mean)/std * w + b = d*scale + b (one madd) ----
    y_ref[...] = (d * tmp_ref[...] + bt_ref[...]).astype(y_ref.dtype)
    # Stats kept in x.dtype to match PyTorch (compute stays f32).
    mean_ref[...] = mean_c.astype(mean_ref.dtype)
    std_ref[...] = std_c.astype(std_ref.dtype)


def _revin_denorm_kernel(x_ref, scale_ref, shift_ref, y_ref):
    # y = (x - b)/(w + eps^2) * std + mean  ==  x*scale + shift,
    # with scale/shift precomputed per (batch, channel) and lane-tiled in the
    # wrapper.  One multiply-add per element, lane-dense.
    y = x_ref[...] * scale_ref[...] + shift_ref[...]
    y_ref[...] = y.astype(y_ref.dtype)


# ----------------------------------------------------------------------------
# Wrappers
# ----------------------------------------------------------------------------
def _pick_packing(seq_len, num_features, max_lanes=128):
    """Fold k time steps into lanes: (B,T,C)->(B,T//k,k*C), k|T, k*C<=128."""
    if num_features >= max_lanes:
        return 1
    best = 1
    for k in range(2, min(max_lanes // num_features, seq_len) + 1):
        if seq_len % k == 0:
            best = k
    return best


def _pick_batch_block(batch, row_elems, itemsize, budget_bytes=24 << 20):
    """Batch rows per grid step.

    Budget covers the input and output blocks in the native dtype, each
    double-buffered by the pipeline (x4), plus roughly two row-sized f32
    intermediates that live inside the kernel body (centered values and the
    pre-cast result).  Stays well under _VMEM_LIMIT_BYTES.
    """
    bytes_per_row = max(row_elems * (4 * itemsize + 8), 1)
    bb = max(1, min(batch, budget_bytes // bytes_per_row))
    # Keep the grid at >=4 steps (>=2 for tiny batches): gives the BlockSpec
    # double buffering something to overlap and lets the "parallel" batch
    # axis shard across both v7x TensorCores.
    if batch >= 4:
        bb = min(bb, batch // 4)
    elif batch >= 2:
        bb = min(bb, batch // 2)
    return int(max(1, bb))


def revin_norm(x, weight, bias, eps=1e-5):
    """mode == 'norm'.  Returns (x_normalized, mean, stdev)."""
    B, T, C = x.shape
    k = _pick_packing(T, C)
    tk, kc = T // k, k * C

    w = weight.astype(jnp.float32).reshape(1, 1, C)
    # Bias is grid-invariant: pre-tile it across the k lane groups.
    b_t = jnp.tile(bias.astype(jnp.float32).reshape(1, 1, C), (1, 1, k))
    xp = x.reshape(B, tk, kc)                     # free contiguous reshape
    bb = _pick_batch_block(B, T * C, x.dtype.itemsize)

    kernel = functools.partial(_revin_norm_kernel, eps=float(eps), seq_len=T,
                               k_groups=k, num_features=C)
    yp, mean, std = pl.pallas_call(
        kernel,
        out_shape=(
            jax.ShapeDtypeStruct((B, tk, kc), x.dtype),
            jax.ShapeDtypeStruct((B, 1, C), x.dtype),
            jax.ShapeDtypeStruct((B, 1, C), x.dtype),
        ),
        grid_spec=pltpu.PrefetchScalarGridSpec(
            num_scalar_prefetch=0,
            grid=(pl.cdiv(B, bb),),
            in_specs=[
                pl.BlockSpec((bb, tk, kc), lambda i: (i, 0, 0)),
                pl.BlockSpec((1, 1, C), lambda i: (0, 0, 0)),
                pl.BlockSpec((1, 1, kc), lambda i: (0, 0, 0)),
            ],
            out_specs=[
                pl.BlockSpec((bb, tk, kc), lambda i: (i, 0, 0)),
                pl.BlockSpec((bb, 1, C), lambda i: (i, 0, 0)),
                pl.BlockSpec((bb, 1, C), lambda i: (i, 0, 0)),
            ],
            scratch_shapes=[pltpu.VMEM((bb, 1, kc), jnp.float32)],
        ),
        compiler_params=pltpu.CompilerParams(
            dimension_semantics=("parallel",),
            vmem_limit_bytes=_VMEM_LIMIT_BYTES),
    )(xp, w, b_t)
    return yp.reshape(B, T, C), mean, std


def revin_denorm(x, mean, stdev, weight, bias, eps=1e-5):
    """mode == 'denorm'."""
    B, T, C = x.shape
    k = _pick_packing(T, C)
    tk, kc = T // k, k * C

    w = weight.astype(jnp.float32).reshape(1, 1, C)
    b = bias.astype(jnp.float32).reshape(1, 1, C)
    # Tiny (B*C) per-(batch, channel) scale/shift computed host-side, then
    # lane-tiled so the kernel is a single lane-dense madd per element.
    scale = stdev.astype(jnp.float32).reshape(B, 1, C) / (w + eps * eps)
    shift = mean.astype(jnp.float32).reshape(B, 1, C) - b * scale
    scale_t = jnp.tile(scale, (1, 1, k))
    shift_t = jnp.tile(shift, (1, 1, k))
    xp = x.reshape(B, tk, kc)
    bb = _pick_batch_block(B, T * C, x.dtype.itemsize)

    yp = pl.pallas_call(
        _revin_denorm_kernel,
        out_shape=jax.ShapeDtypeStruct((B, tk, kc), x.dtype),
        grid_spec=pltpu.PrefetchScalarGridSpec(
            num_scalar_prefetch=0,
            grid=(pl.cdiv(B, bb),),
            in_specs=[
                pl.BlockSpec((bb, tk, kc), lambda i: (i, 0, 0)),
                pl.BlockSpec((bb, 1, kc), lambda i: (i, 0, 0)),
                pl.BlockSpec((bb, 1, kc), lambda i: (i, 0, 0)),
            ],
            out_specs=pl.BlockSpec((bb, tk, kc), lambda i: (i, 0, 0)),
        ),
        compiler_params=pltpu.CompilerParams(
            dimension_semantics=("parallel",),
            vmem_limit_bytes=_VMEM_LIMIT_BYTES),
    )(xp, scale_t, shift_t)
    return yp.reshape(B, T, C)


# ----------------------------------------------------------------------------
# Pure-JAX reference (mirrors PyTorch semantics exactly)
# ----------------------------------------------------------------------------
def _ref_norm(x, weight, bias, eps=1e-5):
    mean = jnp.mean(x, axis=1, keepdims=True)
    var = jnp.var(x, axis=1, keepdims=True)  # unbiased=False
    std = jnp.sqrt(var + eps)
    y = (x - mean) / std
    y = y * weight.reshape(1, 1, -1) + bias.reshape(1, 1, -1)
    return y, mean, std


def _ref_denorm(x, mean, std, weight, bias, eps=1e-5):
    y = x - bias.reshape(1, 1, -1)
    y = y / (weight.reshape(1, 1, -1) + eps * eps)
    y = y * std + mean
    return y


# ----------------------------------------------------------------------------
if __name__ == "__main__":
    def run_case(key, B, T, C, eps=1e-5):
        x = jax.random.normal(key, (B, T, C), dtype=jnp.float32) * 3.0 + 1.5
        # RevIN._init_params() is ones/zeros; use non-trivial deterministic
        # values so the affine path is genuinely exercised.
        w = 1.0 + 0.1 * jnp.arange(C, dtype=jnp.float32)
        b = 0.05 * jnp.arange(C, dtype=jnp.float32) - 0.1

        y, mean, std = revin_norm(x, w, b, eps=eps)
        x_rec = revin_denorm(y, mean, std, w, b, eps=eps)
        jax.block_until_ready((y, mean, std, x_rec))

        y_r, m_r, s_r = _ref_norm(x, w, b, eps)
        x_rec_r = _ref_denorm(y_r, m_r, s_r, w, b, eps)

        assert y.shape == (B, T, C) and mean.shape == (B, 1, C)
        assert jnp.allclose(y, y_r, atol=1e-5, rtol=1e-5)
        assert jnp.allclose(mean, m_r, atol=1e-5, rtol=1e-5)
        assert jnp.allclose(std, s_r, atol=1e-5, rtol=1e-5)
        assert jnp.allclose(x_rec, x_rec_r, atol=1e-5, rtol=1e-5)
        assert jnp.allclose(x_rec, x, atol=1e-4, rtol=1e-4)

    k1, k2 = jax.random.split(jax.random.PRNGKey(0))
    run_case(k1, B=2, T=8, C=4)     # packs k=8 -> 32 lanes, Tk=1, grid=2
    run_case(k2, B=3, T=12, C=24)   # packs k=4 -> 96 lanes, Tk=3, grid=3
    print("KERNEL_OK")
</pallas_src>

<mosaic_0001>
module attributes {stable_mosaic.version = 11 : i64} {
  func.func @_revin_norm_kernel(%arg0: i32, %arg1: memref<1x1x32xf32, #tpu.memory_space<vmem>>, %arg2: memref<1x1x4xf32, #tpu.memory_space<vmem>>, %arg3: memref<1x1x32xf32, #tpu.memory_space<vmem>>, %arg4: memref<1x1x32xf32, #tpu.memory_space<vmem>>, %arg5: memref<1x1x4xf32, #tpu.memory_space<vmem>>, %arg6: memref<1x1x4xf32, #tpu.memory_space<vmem>>, %arg7: memref<1x1x32xf32, #tpu.memory_space<vmem>>) attributes {dimension_semantics = [#tpu.dimension_semantics<parallel>], iteration_bounds = array<i64: 2>, scalar_prefetch = 0 : i64, scratch_operands = 1 : i64, tpu.core_type = #tpu.core_type<tc>, window_params = [{transform_indices = @transform_0, window_bounds = array<i64: 1, 1, 32>}, {pipeline_mode = #tpu.pipeline_mode<synchronous>, transform_indices = @transform_1, window_bounds = array<i64: 1, 1, 4>}, {pipeline_mode = #tpu.pipeline_mode<synchronous>, transform_indices = @transform_2, window_bounds = array<i64: 1, 1, 32>}, {transform_indices = @transform_3, window_bounds = array<i64: 1, 1, 32>}, {transform_indices = @transform_4, window_bounds = array<i64: 1, 1, 4>}, {transform_indices = @transform_5, window_bounds = array<i64: 1, 1, 4>}]} {
    %c0 = arith.constant 0 : index
    %c0_0 = arith.constant 0 : index
    %c0_1 = arith.constant 0 : index
    %0 = vector.load %arg1[%c0, %c0_0, %c0_1] : memref<1x1x32xf32, #tpu.memory_space<vmem>>, vector<1x1x32xf32>
    %cst = arith.constant dense<0.000000e+00> : vector<1x32xf32>
    %1 = vector.multi_reduction <add>, %0, %cst [1] : vector<1x1x32xf32> to vector<1x32xf32>
    %2 = vector.shape_cast %1 : vector<1x32xf32> to vector<1x1x32xf32>
    %c0_2 = arith.constant 0 : index
    %c0_3 = arith.constant 0 : index
    %c0_4 = arith.constant 0 : index
    %3 = vector.load %arg7[%c0_2, %c0_3, %c0_4] : memref<1x1x32xf32, #tpu.memory_space<vmem>>, vector<1x1x32xf32>
    tpu.vector_store %arg7[%c0_2, %c0_3, %c0_4], %2 {strides = array<i32>} : memref<1x1x32xf32, #tpu.memory_space<vmem>>, vector<1x1x32xf32>,
    %c0_5 = arith.constant 0 : index
    %c0_6 = arith.constant 0 : index
    %c0_7 = arith.constant 0 : index
    %4 = vector.load %arg7[%c0_5, %c0_6, %c0_7] : memref<1x1x32xf32, #tpu.memory_space<vmem>>, vector<1x1x4xf32>
    %c0_8 = arith.constant 0 : index
    %c0_9 = arith.constant 0 : index
    %c4 = arith.constant 4 : index
    %5 = vector.load %arg7[%c0_8, %c0_9, %c4] : memref<1x1x32xf32, #tpu.memory_space<vmem>>, vector<1x1x4xf32>
    %6 = arith.addf %4, %5 : vector<1x1x4xf32>
    %c0_10 = arith.constant 0 : index
    %c0_11 = arith.constant 0 : index
    %c8 = arith.constant 8 : index
    %7 = vector.load %arg7[%c0_10, %c0_11, %c8] : memref<1x1x32xf32, #tpu.memory_space<vmem>>, vector<1x1x4xf32>
    %8 = arith.addf %6, %7 : vector<1x1x4xf32>
    %c0_12 = arith.constant 0 : index
    %c0_13 = arith.constant 0 : index
    %c12 = arith.constant 12 : index
    %9 = vector.load %arg7[%c0_12, %c0_13, %c12] : memref<1x1x32xf32, #tpu.memory_space<vmem>>, vector<1x1x4xf32>
    %10 = arith.addf %8, %9 : vector<1x1x4xf32>
    %c0_14 = arith.constant 0 : index
    %c0_15 = arith.constant 0 : index
    %c16 = arith.constant 16 : index
    %11 = vector.load %arg7[%c0_14, %c0_15, %c16] : memref<1x1x32xf32, #tpu.memory_space<vmem>>, vector<1x1x4xf32>
    %12 = arith.addf %10, %11 : vector<1x1x4xf32>
    %c0_16 = arith.constant 0 : index
    %c0_17 = arith.constant 0 : index
    %c20 = arith.constant 20 : index
    %13 = vector.load %arg7[%c0_16, %c0_17, %c20] : memref<1x1x32xf32, #tpu.memory_space<vmem>>, vector<1x1x4xf32>
    %14 = arith.addf %12, %13 : vector<1x1x4xf32>
    %c0_18 = arith.constant 0 : index
    %c0_19 = arith.constant 0 : index
    %c24 = arith.constant 24 : index
    %15 = vector.load %arg7[%c0_18, %c0_19, %c24] : memref<1x1x32xf32, #tpu.memory_space<vmem>>, vector<1x1x4xf32>
    %16 = arith.addf %14, %15 : vector<1x1x4xf32>
    %c0_20 = arith.constant 0 : index
    %c0_21 = arith.constant 0 : index
    %c28 = arith.constant 28 : index
    %17 = vector.load %arg7[%c0_20, %c0_21, %c28] : memref<1x1x32xf32, #tpu.memory_space<vmem>>, vector<1x1x4xf32>
    %18 = arith.addf %16, %17 : vector<1x1x4xf32>
    %cst_22 = arith.constant 1.250000e-01 : f32
    %19 = vector.broadcast %cst_22 : f32 to vector<1x1x4xf32>
    %20 = arith.mulf %18, %19 : vector<1x1x4xf32>
    %c0_23 = arith.constant 0 : index
    %c0_24 = arith.constant 0 : index
    %c0_25 = arith.constant 0 : index
    %21 = vector.load %arg7[%c0_23, %c0_24, %c0_25] : memref<1x1x32xf32, #tpu.memory_space<vmem>>, vector<1x1x4xf32>
    tpu.vector_store %arg7[%c0_23, %c0_24, %c0_25], %20 {strides = array<i32>} : memref<1x1x32xf32, #tpu.memory_space<vmem>>, vector<1x1x4xf32>,
    %c0_26 = arith.constant 0 : index
    %c0_27 = arith.constant 0 : index
    %c4_28 = arith.constant 4 : index
    %22 = vector.load %arg7[%c0_26, %c0_27, %c4_28] : memref<1x1x32xf32, #tpu.memory_space<vmem>>, vector<1x1x4xf32>
    tpu.vector_store %arg7[%c0_26, %c0_27, %c4_28], %20 {strides = array<i32>} : memref<1x1x32xf32, #tpu.memory_space<vmem>>, vector<1x1x4xf32>,
    %c0_29 = arith.constant 0 : index
    %c0_30 = arith.constant 0 : index
    %c8_31 = arith.constant 8 : index
    %23 = vector.load %arg7[%c0_29, %c0_30, %c8_31] : memref<1x1x32xf32, #tpu.memory_space<vmem>>, vector<1x1x4xf32>
    tpu.vector_store %arg7[%c0_29, %c0_30, %c8_31], %20 {strides = array<i32>} : memref<1x1x32xf32, #tpu.memory_space<vmem>>, vector<1x1x4xf32>,
    %c0_32 = arith.constant 0 : index
    %c0_33 = arith.constant 0 : index
    %c12_34 = arith.constant 12 : index
    %24 = vector.load %arg7[%c0_32, %c0_33, %c12_34] : memref<1x1x32xf32, #tpu.memory_space<vmem>>, vector<1x1x4xf32>
    tpu.vector_store %arg7[%c0_32, %c0_33, %c12_34], %20 {strides = array<i32>} : memref<1x1x32xf32, #tpu.memory_space<vmem>>, vector<1x1x4xf32>,
    %c0_35 = arith.constant 0 : index
    %c0_36 = arith.constant 0 : index
    %c16_37 = arith.constant 16 : index
    %25 = vector.load %arg7[%c0_35, %c0_36, %c16_37] : memref<1x1x32xf32, #tpu.memory_space<vmem>>, vector<1x1x4xf32>
    tpu.vector_store %arg7[%c0_35, %c0_36, %c16_37], %20 {strides = array<i32>} : memref<1x1x32xf32, #tpu.memory_space<vmem>>, vector<1x1x4xf32>,
    %c0_38 = arith.constant 0 : index
    %c0_39 = arith.constant 0 : index
    %c20_40 = arith.constant 20 : index
    %26 = vector.load %arg7[%c0_38, %c0_39, %c20_40] : memref<1x1x32xf32, #tpu.memory_space<vmem>>, vector<1x1x4xf32>
    tpu.vector_store %arg7[%c0_38, %c0_39, %c20_40], %20 {strides = array<i32>} : memref<1x1x32xf32, #tpu.memory_space<vmem>>, vector<1x1x4xf32>,
    %c0_41 = arith.constant 0 : index
    %c0_42 = arith.constant 0 : index
    %c24_43 = arith.constant 24 : index
    %27 = vector.load %arg7[%c0_41, %c0_42, %c24_43] : memref<1x1x32xf32, #tpu.memory_space<vmem>>, vector<1x1x4xf32>
    tpu.vector_store %arg7[%c0_41, %c0_42, %c24_43], %20 {strides = array<i32>} : memref<1x1x32xf32, #tpu.memory_space<vmem>>, vector<1x1x4xf32>,
    %c0_44 = arith.constant 0 : index
    %c0_45 = arith.constant 0 : index
    %c28_46 = arith.constant 28 : index
    %28 = vector.load %arg7[%c0_44, %c0_45, %c28_46] : memref<1x1x32xf32, #tpu.memory_space<vmem>>, vector<1x1x4xf32>
    tpu.vector_store %arg7[%c0_44, %c0_45, %c28_46], %20 {strides = array<i32>} : memref<1x1x32xf32, #tpu.memory_space<vmem>>, vector<1x1x4xf32>,
    %c0_47 = arith.constant 0 : index
    %c0_48 = arith.constant 0 : index
    %c0_49 = arith.constant 0 : index
    %29 = vector.load %arg7[%c0_47, %c0_48, %c0_49] : memref<1x1x32xf32, #tpu.memory_space<vmem>>, vector<1x1x32xf32>
    %30 = arith.subf %0, %29 : vector<1x1x32xf32>
    %31 = arith.mulf %30, %30 : vector<1x1x32xf32>
    %cst_50 = arith.constant dense<0.000000e+00> : vector<1x32xf32>
    %32 = vector.multi_reduction <add>, %31, %cst_50 [1] : vector<1x1x32xf32> to vector<1x32xf32>
    %33 = vector.shape_cast %32 : vector<1x32xf32> to vector<1x1x32xf32>
    %c0_51 = arith.constant 0 : index
    %c0_52 = arith.constant 0 : index
    %c0_53 = arith.constant 0 : index
    %34 = vector.load %arg7[%c0_51, %c0_52, %c0_53] : memref<1x1x32xf32, #tpu.memory_space<vmem>>, vector<1x1x32xf32>
    tpu.vector_store %arg7[%c0_51, %c0_52, %c0_53], %33 {strides = array<i32>} : memref<1x1x32xf32, #tpu.memory_space<vmem>>, vector<1x1x32xf32>,
    %c0_54 = arith.constant 0 : index
    %c0_55 = arith.constant 0 : index
    %c0_56 = arith.constant 0 : index
    %35 = vector.load %arg7[%c0_54, %c0_55, %c0_56] : memref<1x1x32xf32, #tpu.memory_space<vmem>>, vector<1x1x4xf32>
    %c0_57 = arith.constant 0 : index
    %c0_58 = arith.constant 0 : index
    %c4_59 = arith.constant 4 : index
    %36 = vector.load %arg7[%c0_57, %c0_58, %c4_59] : memref<1x1x32xf32, #tpu.memory_space<vmem>>, vector<1x1x4xf32>
    %37 = arith.addf %35, %36 : vector<1x1x4xf32>
    %c0_60 = arith.constant 0 : index
    %c0_61 = arith.constant 0 : index
    %c8_62 = arith.constant 8 : index
    %38 = vector.load %arg7[%c0_60, %c0_61, %c8_62] : memref<1x1x32xf32, #tpu.memory_space<vmem>>, vector<1x1x4xf32>
    %39 = arith.addf %37, %38 : vector<1x1x4xf32>
    %c0_63 = arith.constant 0 : index
    %c0_64 = arith.constant 0 : index
    %c12_65 = arith.constant 12 : index
    %40 = vector.load %arg7[%c0_63, %c0_64, %c12_65] : memref<1x1x32xf32, #tpu.memory_space<vmem>>, vector<1x1x4xf32>
    %41 = arith.addf %39, %40 : vector<1x1x4xf32>
    %c0_66 = arith.constant 0 : index
    %c0_67 = arith.constant 0 : index
    %c16_68 = arith.constant 16 : index
    %42 = vector.load %arg7[%c0_66, %c0_67, %c16_68] : memref<1x1x32xf32, #tpu.memory_space<vmem>>, vector<1x1x4xf32>
    %43 = arith.addf %41, %42 : vector<1x1x4xf32>
    %c0_69 = arith.constant 0 : index
    %c0_70 = arith.constant 0 : index
    %c20_71 = arith.constant 20 : index
    %44 = vector.load %arg7[%c0_69, %c0_70, %c20_71] : memref<1x1x32xf32, #tpu.memory_space<vmem>>, vector<1x1x4xf32>
    %45 = arith.addf %43, %44 : vector<1x1x4xf32>
    %c0_72 = arith.constant 0 : index
    %c0_73 = arith.constant 0 : index
    %c24_74 = arith.constant 24 : index
    %46 = vector.load %arg7[%c0_72, %c0_73, %c24_74] : memref<1x1x32xf32, #tpu.memory_space<vmem>>, vector<1x1x4xf32>
    %47 = arith.addf %45, %46 : vector<1x1x4xf32>
    %c0_75 = arith.constant 0 : index
    %c0_76 = arith.constant 0 : index
    %c28_77 = arith.constant 28 : index
    %48 = vector.load %arg7[%c0_75, %c0_76, %c28_77] : memref<1x1x32xf32, #tpu.memory_space<vmem>>, vector<1x1x4xf32>
    %49 = arith.addf %47, %48 : vector<1x1x4xf32>
    %cst_78 = arith.constant 1.250000e-01 : f32
    %50 = vector.broadcast %cst_78 : f32 to vector<1x1x4xf32>
    %51 = arith.mulf %49, %50 : vector<1x1x4xf32>
    %cst_79 = arith.constant 9.99999974E-6 : f32
    %52 = vector.broadcast %cst_79 : f32 to vector<1x1x4xf32>
    %53 = arith.addf %51, %52 : vector<1x1x4xf32>
    %54 = math.sqrt %53 : vector<1x1x4xf32>
    %c0_80 = arith.constant 0 : index
    %c0_81 = arith.constant 0 : index
    %c0_82 = arith.constant 0 : index
    %55 = vector.load %arg2[%c0_80, %c0_81, %c0_82] : memref<1x1x4xf32, #tpu.memory_space<vmem>>, vector<1x1x4xf32>
    %cst_83 = arith.constant 9.99999974E-6 : f32
    %56 = vector.broadcast %cst_83 : f32 to vector<1x1x4xf32>
    %57 = arith.addf %51, %56 : vector<1x1x4xf32>
    %58 = math.rsqrt %57 : vector<1x1x4xf32>
    %59 = arith.mulf %55, %58 : vector<1x1x4xf32>
    %c0_84 = arith.constant 0 : index
    %c0_85 = arith.constant 0 : index
    %c0_86 = arith.constant 0 : index
    %60 = vector.load %arg7[%c0_84, %c0_85, %c0_86] : memref<1x1x32xf32, #tpu.memory_space<vmem>>, vector<1x1x4xf32>
    tpu.vector_store %arg7[%c0_84, %c0_85, %c0_86], %59 {strides = array<i32>} : memref<1x1x32xf32, #tpu.memory_space<vmem>>, vector<1x1x4xf32>,
    %c0_87 = arith.constant 0 : index
    %c0_88 = arith.constant 0 : index
    %c4_89 = arith.constant 4 : index
    %61 = vector.load %arg7[%c0_87, %c0_88, %c4_89] : memref<1x1x32xf32, #tpu.memory_space<vmem>>, vector<1x1x4xf32>
    tpu.vector_store %arg7[%c0_87, %c0_88, %c4_89], %59 {strides = array<i32>} : memref<1x1x32xf32, #tpu.memory_space<vmem>>, vector<1x1x4xf32>,
    %c0_90 = arith.constant 0 : index
    %c0_91 = arith.constant 0 : index
    %c8_92 = arith.constant 8 : index
    %62 = vector.load %arg7[%c0_90, %c0_91, %c8_92] : memref<1x1x32xf32, #tpu.memory_space<vmem>>, vector<1x1x4xf32>
    tpu.vector_store %arg7[%c0_90, %c0_91, %c8_92], %59 {strides = array<i32>} : memref<1x1x32xf32, #tpu.memory_space<vmem>>, vector<1x1x4xf32>,
    %c0_93 = arith.constant 0 : index
    %c0_94 = arith.constant 0 : index
    %c12_95 = arith.constant 12 : index
    %63 = vector.load %arg7[%c0_93, %c0_94, %c12_95] : memref<1x1x32xf32, #tpu.memory_space<vmem>>, vector<1x1x4xf32>
    tpu.vector_store %arg7[%c0_93, %c0_94, %c12_95], %59 {strides = array<i32>} : memref<1x1x32xf32, #tpu.memory_space<vmem>>, vector<1x1x4xf32>,
    %c0_96 = arith.constant 0 : index
    %c0_97 = arith.constant 0 : index
    %c16_98 = arith.constant 16 : index
    %64 = vector.load %arg7[%c0_96, %c0_97, %c16_98] : memref<1x1x32xf32, #tpu.memory_space<vmem>>, vector<1x1x4xf32>
    tpu.vector_store %arg7[%c0_96, %c0_97, %c16_98], %59 {strides = array<i32>} : memref<1x1x32xf32, #tpu.memory_space<vmem>>, vector<1x1x4xf32>,
    %c0_99 = arith.constant 0 : index
    %c0_100 = arith.constant 0 : index
    %c20_101 = arith.constant 20 : index
    %65 = vector.load %arg7[%c0_99, %c0_100, %c20_101] : memref<1x1x32xf32, #tpu.memory_space<vmem>>, vector<1x1x4xf32>
    tpu.vector_store %arg7[%c0_99, %c0_100, %c20_101], %59 {strides = array<i32>} : memref<1x1x32xf32, #tpu.memory_space<vmem>>, vector<1x1x4xf32>,
    %c0_102 = arith.constant 0 : index
    %c0_103 = arith.constant 0 : index
    %c24_104 = arith.constant 24 : index
    %66 = vector.load %arg7[%c0_102, %c0_103, %c24_104] : memref<1x1x32xf32, #tpu.memory_space<vmem>>, vector<1x1x4xf32>
    tpu.vector_store %arg7[%c0_102, %c0_103, %c24_104], %59 {strides = array<i32>} : memref<1x1x32xf32, #tpu.memory_space<vmem>>, vector<1x1x4xf32>,
    %c0_105 = arith.constant 0 : index
    %c0_106 = arith.constant 0 : index
    %c28_107 = arith.constant 28 : index
    %67 = vector.load %arg7[%c0_105, %c0_106, %c28_107] : memref<1x1x32xf32, #tpu.memory_space<vmem>>, vector<1x1x4xf32>
    tpu.vector_store %arg7[%c0_105, %c0_106, %c28_107], %59 {strides = array<i32>} : memref<1x1x32xf32, #tpu.memory_space<vmem>>, vector<1x1x4xf32>,
    %c0_108 = arith.constant 0 : index
    %c0_109 = arith.constant 0 : index
    %c0_110 = arith.constant 0 : index
    %68 = vector.load %arg7[%c0_108, %c0_109, %c0_110] : memref<1x1x32xf32, #tpu.memory_space<vmem>>, vector<1x1x32xf32>
    %69 = arith.mulf %30, %68 : vector<1x1x32xf32>
    %c0_111 = arith.constant 0 : index
    %c0_112 = arith.constant 0 : index
    %c0_113 = arith.constant 0 : index
    %70 = vector.load %arg3[%c0_111, %c0_112, %c0_113] : memref<1x1x32xf32, #tpu.memory_space<vmem>>, vector<1x1x32xf32>
    %71 = arith.addf %69, %70 : vector<1x1x32xf32>
    %c0_114 = arith.constant 0 : index
    %c0_115 = arith.constant 0 : index
    %c0_116 = arith.constant 0 : index
    %72 = vector.load %arg4[%c0_114, %c0_115, %c0_116] : memref<1x1x32xf32, #tpu.memory_space<vmem>>, vector<1x1x32xf32>
    tpu.vector_store %arg4[%c0_114, %c0_115, %c0_116], %71 {strides = array<i32>} : memref<1x1x32xf32, #tpu.memory_space<vmem>>, vector<1x1x32xf32>,
    %c0_117 = arith.constant 0 : index
    %c0_118 = arith.constant 0 : index
    %c0_119 = arith.constant 0 : index
    %73 = vector.load %arg5[%c0_117, %c0_118, %c0_119] : memref<1x1x4xf32, #tpu.memory_space<vmem>>, vector<1x1x4xf32>
    tpu.vector_store %arg5[%c0_117, %c0_118, %c0_119], %20 {strides = array<i32>} : memref<1x1x4xf32, #tpu.memory_space<vmem>>, vector<1x1x4xf32>,
    %c0_120 = arith.constant 0 : index
    %c0_121 = arith.constant 0 : index
    %c0_122 = arith.constant 0 : index
    %74 = vector.load %arg6[%c0_120, %c0_121, %c0_122] : memref<1x1x4xf32, #tpu.memory_space<vmem>>, vector<1x1x4xf32>
    tpu.vector_store %arg6[%c0_120, %c0_121, %c0_122], %54 {strides = array<i32>} : memref<1x1x4xf32, #tpu.memory_space<vmem>>, vector<1x1x4xf32>,
    return
  }
  func.func @transform_0(%arg0: i32) -> (i32, i32, i32) {
    %c0_i32 = arith.constant 0 : i32
    %c0_i32_0 = arith.constant 0 : i32
    %c0_i32_1 = arith.constant 0 : i32
    return %arg0, %c0_i32, %c0_i32_0 : i32, i32, i32
  }
  func.func @transform_1(%arg0: i32) -> (i32, i32, i32) {
    %c0_i32 = arith.constant 0 : i32
    %c0_i32_0 = arith.constant 0 : i32
    %c0_i32_1 = arith.constant 0 : i32
    %c0_i32_2 = arith.constant 0 : i32
    return %c0_i32, %c0_i32_0, %c0_i32_1 : i32, i32, i32
  }
  func.func @transform_2(%arg0: i32) -> (i32, i32, i32) {
    %c0_i32 = arith.constant 0 : i32
    %c0_i32_0 = arith.constant 0 : i32
    %c0_i32_1 = arith.constant 0 : i32
    %c0_i32_2 = arith.constant 0 : i32
    return %c0_i32, %c0_i32_0, %c0_i32_1 : i32, i32, i32
  }
  func.func @transform_3(%arg0: i32) -> (i32, i32, i32) {
    %c0_i32 = arith.constant 0 : i32
    %c0_i32_0 = arith.constant 0 : i32
    %c0_i32_1 = arith.constant 0 : i32
    return %arg0, %c0_i32, %c0_i32_0 : i32, i32, i32
  }
  func.func @transform_4(%arg0: i32) -> (i32, i32, i32) {
    %c0_i32 = arith.constant 0 : i32
    %c0_i32_0 = arith.constant 0 : i32
    %c0_i32_1 = arith.constant 0 : i32
    return %arg0, %c0_i32, %c0_i32_0 : i32, i32, i32
  }
  func.func @transform_5(%arg0: i32) -> (i32, i32, i32) {
    %c0_i32 = arith.constant 0 : i32
    %c0_i32_0 = arith.constant 0 : i32
    %c0_i32_1 = arith.constant 0 : i32
    return %arg0, %c0_i32, %c0_i32_0 : i32, i32, i32
  }
}

</mosaic_0001>

<bundles_post_ra>
// kernel: tpu_custom_call.1
= control target key start
LH: loop header
LB: loop body
LE: loop exit
PB: predicated region body
PF: predicated region fallthrough
CT: control target
= control target key end

     0   :  { %11 = vsyncpa [#allocation4], 0  ;;  %s1188_s0 = inlined_call_operand.hbm [shape: f32[2,1,32], index: 0, kind: input, shape index: {}]   ;;  %s1189_s1 = inlined_call_operand.hbm [shape: f32[1,1,4], index: 1, kind: input, shape index: {}]   ;;  %s1190_s2 = inlined_call_operand.vmem [shape: f32[1,1,32], index: 2, kind: input, shape index: {}]   ;;  %s1191_s3 = inlined_call_operand.hbm [shape: f32[2,1,32], index: 3, kind: output, shape index: {0}]   ;;  %s1192_s4 = inlined_call_operand.hbm [shape: f32[2,1,4], index: 4, kind: output, shape index: {1}]   ;;  %s1193_s5 = inlined_call_operand.hbm [shape: f32[2,1,4], index: 5, kind: output, shape index: {2}]  }
   0x1   :  { %13 = vsyncpa [#allocation4 + $0x1], 0 }
   0x2   :  { %14 = vsyncpa [#allocation7], 0 }
   0x3   :  { %15 = vsyncpa [#allocation5], 0 }
   0x4   :  { %17 = vsyncpa [#allocation5 + $0x1], 0 }
   0x5   :  { %18 = vsyncpa [#allocation10], 0 }
   0x6   :  { %20 = vsyncpa [#allocation10 + $0x1], 0  ;;  %s941_s18 = smov 0   ;;  %s943_s19 = smov 0  }
   0x7   :  { %s945_s20 = smov 0   ;;  %s947_s21 = smov 0  }
   0x8 LB: > { %s962_s22 = sadd.s32 4294967295, %s894_s21   ;;  %s1194_s23 = sadd.s32 4294967294, %s894_s21   ;;  %s894_s21 = sphi %s947_s21, %s1207_s21   ;;  %s890_s20 = sphi %s945_s20, %s1206_s20   ;;  %s886_s19 = sphi %s943_s19, %s1205_s19   ;;  %s882_s18 = sphi %s941_s18, %s1204_s18  }
   0x9   : > { %p46_p0 = scmp.ne.s32.totalorder %s886_s19, %s882_s18  ;;  %p47_p1 = scmp.eq.s32.totalorder %s962_s22, 0 }
   0xa   : > { %p112_p2 = scmp.eq.s32.totalorder %s962_s22, 1  ;;  %p118_p3 = scmp.eq.s32.totalorder %s1194_s23, 1 }
   0xb   : > { %p973_p4 = por %p47_p1, %p46_p0  ;;  %p614_p5 = scmp.ge.s32.totalorder %s894_s21, 1 }
   0xc   : > { %p978_p6 = por %p118_p3, %p46_p0  ;;  %p177_p7 = scmp.lt.s32.totalorder %s894_s21, 3 }
   0xd   : > { %s189_s28 = sshll.u32 %s1189_s1, 4  ;;  %s896_s30 = smov [#allocation6]   ;;  %s190_s28 = int_to_ptr.hbm [resolvable:$true] %s189_s28 }
   0xe   : > { %p986_p8 = pnand %p614_p5, %p177_p7  ;;  %s191_s6 = sshll.u32 %s896_s30, 4  ;;  %s192_s6 = int_to_ptr.vmem [resolvable:$true] %s191_s6 }
   0xf   : > { %s996_s7 = sadd.s32 1, %s894_s21   ;;  %s33_s8 = sadd.s32 1, %s890_s20 }
  0x10   : > { %p633_p10 = pneg %p986_p8  ;;  %s30_s9 = ssub.s32 %s894_s21, %s996_s7 }
  0x11   : > { %p31_p12 = scmp.eq.s32.totalorder %s30_s9, 0  ;;  %p40_p13 = scmp.ne.s32.totalorder %s890_s20, %s886_s19 }
  0x12   : > { %p634_p11 = pnand %p633_p10, %p47_p1  ;;  %p41_p0 = scmp.eq.s32.totalorder %s894_s21, 0 }
  0x13   : > { %p652_p3 = scmp.lt.s32.totalorder %s894_s21, 2  ;;  %p1010_p7 = por %p112_p2, %p40_p13 }
  0x14   : > { %636 = dma.hbm_to_vmem [thread:$0]  (!%p634_p11), %s190_s28, 16, %s192_s6, [#allocation7]  }
  0x15   : > { %s1006_s10 = scalar_select %p31_p12, %s890_s20, %s33_s8  }
  0x16   : > { %p42_p5 = por %p41_p0, %p40_p13  ;;  %s205_s12 = sand.u32 1, %s890_s20  }
  0x17   : > { %s211_s15 = scalar_lea.hbm %s1188_s0, %s894_s21  ;;  %s208_s17 = scalar_lea.vmem [#allocation3], %s205_s12 }
  0x18   : > { %s213_s16 = sshll.u32 %s211_s15, 4  ;;  %s215_s26 = sshll.u32 %s208_s17, 4  ;;  %s214_s16 = int_to_ptr.hbm [resolvable:$true] %s213_s16  ;;  %s216_s26 = int_to_ptr.vmem [resolvable:$true] %s215_s26 }
  0x19   : > { %p1019_p10 = pnand %p652_p3, %p42_p5  ;;  %s206_s28 = scalar_lea.sflag [#allocation4], %s205_s12 }
  0x1a   : > { %s734_s30 = sshra.s32 %s214_s16, 4  ;;  %s741_s13 = scalar_lea.hbm %s1188_s0, 2  ;;  %s735_s30 = int_to_ptr.hbm [resolvable:$true] %s734_s30 }
  0x1b   : > { %s736_s6 = scalar_lea.hbm %s735_s30, 1  ;;  %p738_p11 = pneg %p1019_p10 }
  0x1c   : > { %p737_p2 = scmp.ne.s32.totalorder %s735_s30, %s736_s6  ;;  %p742_p0 = scmp.lt.s32.totalorder %s735_s30, %s1188_s0 }
  0x1d   : > { %p743_p3 = scmp.lt.s32.totalorder %s741_s13, %s736_s6 }
  0x1e   : > { %p739_p12 = pnand %p738_p11, %p737_p2 }
  0x1f   : > { %p744_p5 = por %p743_p3, %p742_p0 }
  0x20   : > { %p740_p13 = pneg %p739_p12 }
  0x22   : > { %p745_p9 = pnand %p744_p5, %p740_p13 }
  0x24   : > { %748 = shalt.err (!%p745_p9)
}
  0x25   : > { %640 = dma.hbm_to_vmem [thread:$0]  (!%p1019_p10), %s214_s16, 16, %s216_s26, %s206_s28  }
  0x26   : > { %224 = sbr.rel (%p986_p8) target bundleno = 649 (0x289), region = 32  ;;  %s1036_s12 = sand.u32 (!%p986_p8), 1, %s886_s19  }
  0x27   : > { %s227_s17 = scalar_lea.sflag (!%p986_p8), [#allocation4], %s1036_s12  ;;  %s229_s8 = scalar_lea.vmem (!%p986_p8), [#allocation3], %s1036_s12 }
  0x2b   : > { %865 = dma.done.wait (%p973_p4), %s227_s17, 16  }
  0x2c   : > { %867 = vsyncadd (%p973_p4), %s227_s17, 4294967280 }
  0x2d   : > { %869 = dma.done.wait (%p47_p1), [#allocation7], 16  }
  0x2e   : > { %871 = vsyncadd (%p47_p1), [#allocation7], 4294967280  ;;  %vm270_vm0 = vcmask 253952   ;;  %v1048_v0 = vld [vmem:[%s229_s8] sm:$0x1]  ;;  %s897_s29 = smov 124  }
  0x2f   : > { %271 = vst.msk [vmem:[#allocation2] sm:$0x1] %vm270_vm0, %v1048_v0  ;;  %s898_s16 = smov 116   ;;  %s899_s24 = smov 108   ;;  %vm303_vm1 = vcmask 24576   ;;  %vm310_vm2 = vcmask 57376  }
  0x30   : > { %s900_s26 = smov 120   ;;  %s901_s27 = smov 112   ;;  %vm315_vm3 = vcmask 90176   ;;  %vm320_vm4 = vcmask 122976   ;;  %vm325_vm5 = vcmask 155776   ;;  %vm330_vm6 = vcmask 188576  }
  0x31   : > { %s902_s28 = smov 104   ;;  %s903_s30 = smov 100   ;;  %vm335_vm7 = vcmask 221376   ;;  %vm340_vm8 = vcmask 254176   ;;  %v391_v51 = vld [vmem:[#allocation6] sm:$0x1] }
  0x32   : > { %s261_s6 = scalar_lea.vmem [#allocation9], %s1036_s12  ;;  %s904_s9 = smov 12  }
  0x33   : > { %s905_s13 = smov 8   ;;  %s906_s14 = smov 4  }
  0x34   : > { %s907_s15 = smov 24   ;;  %s908_s17 = smov 20  }
  0x35   : > { %s909_s8 = smov 16   ;;  %s910_s23 = smov 28  }
  0x36   : > { %v272_v1 = vld [vmem:[#allocation2] sm:$0x1] }
  0x37   : > { %274 = vrot.lane.b32.xlu0 %v272_v1, %s897_s29  ;;  %282 = vrot.lane.b32.xlu1 %v272_v1, %s898_s16 }
  0x38   : > { %290 = vrot.lane.b32.xlu2 %v272_v1, %s899_s24 }
  0x3f   : > { %278 = vrot.lane.b32.xlu0 %v272_v1, %s900_s26  ;;  %286 = vrot.lane.b32.xlu1 %v272_v1, %s901_s27 }
  0x40   : > { %294 = vrot.lane.b32.xlu2 %v272_v1, %s902_s28 }
  0x47   : > { %298 = vrot.lane.b32.xlu0 %v272_v1, %s903_s30 }
  0x92   : > { %v291_v4 = vpop.permute.xlu2 %290 }
  0x9a   : > { %v295_v11 = vpop.permute.xlu2 %294 }
  0xa9   : > { %v275_v2 = vpop.permute.xlu0 %274  ;;  %v283_v3 = vpop.permute.xlu1 %282 }
  0xaa   : > { %v277_v5 = vadd.f32 %v275_v2, %v272_v1 }
  0xb1   : > { %v279_v6 = vpop.permute.xlu0 %278  ;;  %v287_v8 = vpop.permute.xlu1 %286 }
  0xb2   : > { %v281_v7 = vadd.f32 %v279_v6, %v277_v5 }
  0xb4   : > { %v285_v9 = vadd.f32 %v283_v3, %v281_v7 }
  0xb6   : > { %v289_v10 = vadd.f32 %v287_v8, %v285_v9 }
  0xb8   : > { %v293_v12 = vadd.f32 %v291_v4, %v289_v10 }
  0xb9   : > { %v299_v13 = vpop.permute.xlu0 %298 }
  0xba   : > { %v297_v14 = vadd.f32 %v295_v11, %v293_v12 }
  0xbc   : > { %v301_v15 = vadd.f32 %v299_v13, %v297_v14 }
  0xbe   : > { %v302_v16 = vmul.f32 0.125, %v301_v15 }
  0xc0   : > { %v306_v17 = vperm.slane %v302_v16, 0  ;;  %304 = vst.msk [vmem:[#allocation2] sm:$0x1] %vm303_vm1, %v302_v16 }
  0xc1   : > { %439 = vst.msk [vmem:[%s261_s6] sm:$0x1] %vm303_vm1, %v302_v16 }
  0xc2   : > { %317 = vrot.lane.b32.xlu0 %v306_v17, %s904_s9  ;;  %312 = vrot.lane.b32.xlu2 %v306_v17, %s905_s13 }
  0xc3   : > { %307 = vrot.lane.b32.xlu1 %v306_v17, %s906_s14 }
  0xca   : > { %332 = vrot.lane.b32.xlu0 %v306_v17, %s907_s15  ;;  %327 = vrot.lane.b32.xlu2 %v306_v17, %s908_s17 }
  0xcb   : > { %322 = vrot.lane.b32.xlu1 %v306_v17, %s909_s8 }
  0xd3   : > { %337 = vrot.lane.b32.xlu1 %v306_v17, %s910_s23 }
 0x11c   : > { %v313_v18 = vpop.permute.xlu2 %312 }
 0x124   : > { %v328_v22 = vpop.permute.xlu2 %327 }
 0x134   : > { %v318_v19 = vpop.permute.xlu0 %317 }
 0x135   : > { %v308_v20 = vpop.permute.xlu1 %307 }
 0x136   : > { %311 = vst.msk [vmem:[#allocation2] sm:$0x1] %vm310_vm2, %v308_v20 }
 0x137   : > { %316 = vst.msk [vmem:[#allocation2] sm:$0x1] %vm315_vm3, %v313_v18 }
 0x138   : > { %321 = vst.msk [vmem:[#allocation2] sm:$0x1] %vm320_vm4, %v318_v19 }
 0x13c   : > { %v333_v23 = vpop.permute.xlu0 %332 }
 0x13d   : > { %v323_v21 = vpop.permute.xlu1 %322 }
 0x13e   : > { %326 = vst.msk [vmem:[#allocation2] sm:$0x1] %vm325_vm5, %v323_v21 }
 0x13f   : > { %331 = vst.msk [vmem:[#allocation2] sm:$0x1] %vm330_vm6, %v328_v22 }
 0x140   : > { %336 = vst.msk [vmem:[#allocation2] sm:$0x1] %vm335_vm7, %v333_v23 }
 0x145   : > { %v338_v24 = vpop.permute.xlu1 %337 }
 0x146   : > { %341 = vst.msk [vmem:[#allocation2] sm:$0x1] %vm340_vm8, %v338_v24 }
 0x14d   : > { %v342_v25 = vld [vmem:[#allocation2] sm:$0x1] }
 0x14e   : > { %v1079_v26 = vsub.f32 %v1048_v0, %v342_v25 }
 0x150   : > { %v344_v27 = vmul.f32 %v1079_v26, %v1079_v26 }
 0x152   : > { %346 = vst.msk [vmem:[#allocation2] sm:$0x1] %vm270_vm0, %v344_v27 }
 0x159   : > { %v347_v28 = vld [vmem:[#allocation2] sm:$0x1] }
 0x15a   : > { %357 = vrot.lane.b32.xlu1 %v347_v28, %s898_s16  ;;  %353 = vrot.lane.b32.xlu0 %v347_v28, %s900_s26  ;;  %s445_s16 = sand.u32 1, %s962_s22  }
 0x15b   : > { %349 = vrot.lane.b32.xlu2 %v347_v28, %s897_s29  ;;  %s1195_s29 = scalar_lea.vmem [#allocation11], %s1036_s12 }
 0x162   : > { %369 = vrot.lane.b32.xlu1 %v347_v28, %s902_s28  ;;  %365 = vrot.lane.b32.xlu0 %v347_v28, %s899_s24  ;;  %s473_s28 = sshll.u32 %s261_s6, 4  ;;  %s784_s6 = scalar_lea.hbm %s1192_s4, 2  ;;  %s474_s28 = int_to_ptr.vmem [resolvable:$true] %s473_s28 }
 0x163   : > { %361 = vrot.lane.b32.xlu2 %v347_v28, %s901_s27  ;;  %s471_s27 = scalar_lea.hbm %s1192_s4, %s962_s22 }
 0x16b   : > { %373 = vrot.lane.b32.xlu2 %v347_v28, %s903_s30  ;;  %s475_s30 = sshll.u32 %s471_s27, 4  ;;  %s476_s30 = int_to_ptr.hbm [resolvable:$true] %s475_s30 }
 0x1b5   : > { %v350_v29 = vpop.permute.xlu2 %349 }
 0x1b6   : > { %v352_v30 = vadd.f32 %v350_v29, %v347_v28 }
 0x1bd   : > { %v362_v34 = vpop.permute.xlu2 %361 }
 0x1c5   : > { %v374_v41 = vpop.permute.xlu2 %373 }
 0x1cc   : > { %v358_v31 = vpop.permute.xlu1 %357  ;;  %v354_v32 = vpop.permute.xlu0 %353 }
 0x1cd   : > { %v356_v33 = vadd.f32 %v354_v32, %v352_v30 }
 0x1cf   : > { %v360_v35 = vadd.f32 %v358_v31, %v356_v33 }
 0x1d1   : > { %v364_v36 = vadd.f32 %v362_v34, %v360_v35 }
 0x1d4   : > { %v366_v37 = vpop.permute.xlu0 %365  ;;  %v370_v39 = vpop.permute.xlu1 %369 }
 0x1d5   : > { %v368_v38 = vadd.f32 %v366_v37, %v364_v36 }
 0x1d7   : > { %v372_v40 = vadd.f32 %v370_v39, %v368_v38 }
 0x1d9   : > { %v376_v42 = vadd.f32 %v374_v41, %v372_v40 }
 0x1db   : > { %v377_v43 = vmul.f32 0.125, %v376_v42 }
 0x1dd   : > { %v378_v44 = vadd.f32 1e-05, %v377_v43 }
 0x1df   : > { %702 = vrsqrt.f32 %v378_v44  ;;  %vm398_vm10 = vweird.f32 %v378_v44  ;;  %vm386_vm12 = vcmp.eq.f32.partialorder %v378_v44, inf  ;;  %v389_v55 = vand.u32 2147483648, %v378_v44 }
 0x1e0   : > { %vm388_vm13 = vcmp.eq.f32.partialorder %v378_v44, 0.0 }
 0x1e5   : > { %v703_v45 = vpop.eup %702 }
 0x1e6   : > { %v380_v46 = vmul.f32 %v703_v45, %v378_v44  ;;  %vm399_vm9 = vweird.f32 %v703_v45 }
 0x1e7   : > { %vm400_vm11 = vmor %vm398_vm10, %vm399_vm9 }
 0x1e8   : > { %v381_v47 = vmul.f32 %v703_v45, %v380_v46 }
 0x1ea   : > { %v382_v48 = vmul.f32 0.5, %v381_v47 }
 0x1ec   : > { %v383_v49 = vsub.f32 1.5, %v382_v48 }
 0x1ee   : > { %v384_v50 = vmul.f32 %v703_v45, %v383_v49 }
 0x1f0   : > { %v401_v52 = vsel %vm400_vm11, %v703_v45, %v384_v50  ;;  %v385_v53 = vmul.f32 %v384_v50, %v378_v44 }
 0x1f1   : > { %v402_v54 = vmul.f32 %v401_v52, %v391_v51 }
 0x1f2   : > { %v387_v56 = vsel %vm386_vm12, %v378_v44, %v385_v53 }
 0x1f3   : > { %v405_v57 = vperm.slane %v402_v54, 0  ;;  %403 = vst.msk [vmem:[#allocation2] sm:$0x1] %vm303_vm1, %v402_v54  ;;  %v390_v58 = vsel %vm388_vm13, %v389_v55, %v387_v56 }
 0x1f4   : > { %440 = vst.msk [vmem:[%s1195_s29] sm:$0x1] %vm303_vm1, %v390_v58  ;;  %s778_s29 = sshra.s32 %s476_s30, 4  ;;  %s779_s29 = int_to_ptr.hbm [resolvable:$true] %s778_s29 }
 0x1f5   : > { %414 = vrot.lane.b32.xlu2 %v405_v57, %s904_s9  ;;  %410 = vrot.lane.b32.xlu1 %v405_v57, %s905_s13  ;;  %s1108_s9 = scalar_lea.sflag [#allocation10], %s445_s16  ;;  %s780_s13 = scalar_lea.hbm %s779_s29, 1 }
 0x1f6   : > { %406 = vrot.lane.b32.xlu0 %v405_v57, %s906_s14  ;;  %p781_p1 = scmp.ne.s32.totalorder %s779_s29, %s780_s13  ;;  %p785_p9 = scmp.lt.s32.totalorder %s779_s29, %s1192_s4 }
 0x1f7   : > { %p786_p10 = scmp.lt.s32.totalorder %s784_s6, %s780_s13 }
 0x1f8   : > { %p782_p4 = pnand %p781_p1, %p1010_p7 }
 0x1f9   : > { %p787_p2 = por %p786_p10, %p785_p9 }
 0x1fa   : > { %p783_p8 = pneg %p782_p4 }
 0x1fc   : > { %p788_p11 = pnand %p787_p2, %p783_p8 }
 0x1fd   : > { %426 = vrot.lane.b32.xlu2 %v405_v57, %s907_s15  ;;  %422 = vrot.lane.b32.xlu1 %v405_v57, %s908_s17 }
 0x1fe   : > { %791 = shalt.err (!%p788_p11)
}
 0x1ff   : > { %628 = dma.vmem_to_hbm [thread:$0]  (%p1010_p7), %s474_s28, 16, %s476_s30, %s1108_s9   ;;  %418 = vrot.lane.b32.xlu0 %v405_v57, %s909_s8 }
 0x200   : > { %s484_s16 = scalar_lea.hbm %s1193_s5, %s962_s22  ;;  %s1201_s29 = scalar_lea.vmem [#allocation11], %s1036_s12 }
 0x201   : > { %s486_s13 = sshll.u32 %s1201_s29, 4  ;;  %s488_s14 = sshll.u32 %s484_s16, 4  ;;  %s487_s13 = int_to_ptr.vmem [resolvable:$true] %s486_s13  ;;  %s489_s14 = int_to_ptr.hbm [resolvable:$true] %s488_s14 }
 0x202   : > { %s806_s24 = sshra.s32 %s489_s14, 4  ;;  %s812_s30 = scalar_lea.hbm %s1193_s5, 2  ;;  %s807_s24 = int_to_ptr.hbm [resolvable:$true] %s806_s24 }
 0x203   : > { %s808_s6 = scalar_lea.hbm %s807_s24, 1  ;;  %p813_p3 = scmp.lt.s32.totalorder %s807_s24, %s1193_s5 }
 0x204   : > { %p809_p12 = scmp.ne.s32.totalorder %s807_s24, %s808_s6  ;;  %p814_p5 = scmp.lt.s32.totalorder %s812_s30, %s808_s6 }
 0x206   : > { %p810_p13 = pnand %p809_p12, %p1010_p7  ;;  %p815_p1 = por %p814_p5, %p813_p3 }
 0x207   : > { %430 = vrot.lane.b32.xlu0 %v405_v57, %s910_s23 }
 0x208   : > { %p811_p0 = pneg %p810_p13 }
 0x20a   : > { %p816_p4 = pnand %p815_p1, %p811_p0 }
 0x20c   : > { %819 = shalt.err (!%p816_p4)
}
 0x20d   : > { %629 = dma.vmem_to_hbm [thread:$0]  (%p1010_p7), %s487_s13, 16, %s489_s14, %s1108_s9   ;;  %v436_v3 = vld [vmem:[%s1190_s2] sm:$0x1] }
 0x20e   : > { %s458_s15 = scalar_lea.hbm %s1191_s3, %s962_s22  ;;  %s255_s29 = scalar_lea.vmem [#allocation8], %s1036_s12 }
 0x20f   : > { %s460_s13 = sshll.u32 %s255_s29, 4  ;;  %s462_s14 = sshll.u32 %s458_s15, 4  ;;  %s461_s13 = int_to_ptr.vmem [resolvable:$true] %s460_s13  ;;  %s463_s14 = int_to_ptr.hbm [resolvable:$true] %s462_s14 }
 0x210   : > { %s442_s24 = scalar_lea.sflag [#allocation5], %s1036_s12  ;;  %s834_s6 = sshra.s32 %s463_s14, 4  ;;  %s835_s6 = int_to_ptr.hbm [resolvable:$true] %s834_s6 }
 0x211   : > { %s836_s22 = scalar_lea.hbm %s835_s6, 1  ;;  %s840_s30 = scalar_lea.hbm %s1191_s3, 2 }
 0x212   : > { %p837_p8 = scmp.ne.s32.totalorder %s835_s6, %s836_s22  ;;  %p841_p2 = scmp.lt.s32.totalorder %s835_s6, %s1191_s3 }
 0x213   : > { %p842_p11 = scmp.lt.s32.totalorder %s840_s30, %s836_s22 }
 0x214   : > { %p838_p9 = pnand %p837_p8, %p1010_p7 }
 0x215   : > { %p843_p12 = por %p842_p11, %p841_p2 }
 0x216   : > { %p839_p10 = pneg %p838_p9 }
 0x218   : > { %p844_p13 = pnand %p843_p12, %p839_p10 }
 0x24f   : > { %v415_v60 = vpop.permute.xlu2 %414 }
 0x257   : > { %v427_v0 = vpop.permute.xlu2 %426 }
 0x267   : > { %v411_v59 = vpop.permute.xlu1 %410 }
 0x268   : > { %v407_v61 = vpop.permute.xlu0 %406 }
 0x269   : > { %409 = vst.msk [vmem:[#allocation2] sm:$0x1] %vm310_vm2, %v407_v61 }
 0x26a   : > { %413 = vst.msk [vmem:[#allocation2] sm:$0x1] %vm315_vm3, %v411_v59 }
 0x26b   : > { %417 = vst.msk [vmem:[#allocation2] sm:$0x1] %vm320_vm4, %v415_v60 }
 0x26f   : > { %v423_v62 = vpop.permute.xlu1 %422 }
 0x271   : > { %v419_v63 = vpop.permute.xlu0 %418 }
 0x272   : > { %421 = vst.msk [vmem:[#allocation2] sm:$0x1] %vm325_vm5, %v419_v63 }
 0x273   : > { %425 = vst.msk [vmem:[#allocation2] sm:$0x1] %vm330_vm6, %v423_v62 }
 0x274   : > { %429 = vst.msk [vmem:[#allocation2] sm:$0x1] %vm335_vm7, %v427_v0 }
 0x279   : > { %v431_v1 = vpop.permute.xlu0 %430 }
 0x27a   : > { %433 = vst.msk [vmem:[#allocation2] sm:$0x1] %vm340_vm8, %v431_v1 }
 0x281   : > { %v434_v2 = vld [vmem:[#allocation2] sm:$0x1] }
 0x282   : > { %v435_v4 = vmul.f32 %v434_v2, %v1079_v26 }
 0x284   : > { %v437_v5 = vadd.f32 %v436_v3, %v435_v4 }
 0x286   : > { %438 = vst.msk [vmem:[%s255_s29] sm:$0x1] %vm270_vm0, %v437_v5 }
 0x287   : > { %847 = shalt.err (!%p844_p13)
}
 0x288   : > { %627 = dma.vmem_to_hbm [thread:$0]  (%p1010_p7), %s461_s13, 16, %s463_s14, %s442_s24  }
 0x289 PF: > { %s500_s12 = sand.u32 1, %s882_s18   ;;  %p1202_p0 = scmp.ge.s32.totalorder %s894_s21, 2 }
 0x28a   : > { %s501_s23 = scalar_lea.sflag [#allocation5], %s500_s12 }
 0x28b   : > { %p642_p3 = pnand %p1202_p0, %p978_p6 }
 0x28d   : > { %p643_p5 = pneg %p642_p3 }
 0x28f   : > { %873 = dma.done.wait (%p643_p5), %s501_s23, 16  }
 0x290   : > { %875 = vsyncadd (%p643_p5), %s501_s23, 4294967280  ;;  %s1203_s9 = sadd.s32 4294967294, %s894_s21  }
 0x291   : > { %s509_s15 = sand.u32 1, %s1203_s9  }
 0x292   : > { %s510_s17 = scalar_lea.sflag [#allocation10], %s509_s15 }
 0x293   : > { %877 = dma.done.wait (%p643_p5), %s510_s17, 32  }
 0x294   : > { %879 = vsyncadd (%p643_p5), %s510_s17, 4294967264  ;;  %p23_p7 = scmp.ge.s32.totalorder %s996_s7, 4   ;;  %s1204_s18 = smov %s886_s19 }
 0x295   : > { %s1205_s19 = smov %s890_s20  ;;  %s1206_s20 = smov %s1006_s10 }
 0x296   : > { %s1207_s21 = smov %s996_s7  ;;  %25 = sbr.rel (!%p23_p7) target bundleno = 8 (0x8), region = 113 }
 0x29b   :  { %524 = vsyncpa [#allocation4], 1 }
 0x29c   :  { %526 = vsyncpa [#allocation4 + $0x1], 1 }
 0x29d   :  { %527 = vsyncpa [#allocation7], 1 }
 0x29e   :  { %528 = vsyncpa [#allocation5], 1 }
 0x29f   :  { %530 = vsyncpa [#allocation5 + $0x1], 1 }
 0x2a0   :  { %531 = vsyncpa [#allocation10], 1 }
 0x2a1   :  { %533 = vsyncpa [#allocation10 + $0x1], 1 }

</bundles_post_ra>
